<compile_context>
chip_gen: v5e
topology: v5e:2x2
jax: 0.10.0
libtpu: 0.0.40
codegen_flags: <defaults>
</compile_context>

<pallas_src>
import jax
import jax.numpy as jnp
from jax.experimental import pallas as pl
from jax.experimental.pallas import tpu as pltpu

LANE = 128
SUBLANE = 8


def _round_up(x, m):
    return ((x + m - 1) // m) * m


def _pick_tile(total, target, align=LANE):
    """Largest multiple of `align` dividing `total`, <= max(target, align).

    `total` must itself be a multiple of `align`.
    """
    target = max(align, target)
    best = align
    d = align
    while d <= min(total, target):
        if total % d == 0:
            best = d
        d += align
    return best


def _vmem_cap_bytes():
    try:
        info = pltpu.get_tpu_info()
        return int(info.vmem_capacity_bytes * 0.70)
    except Exception:
        # Safe on v7x (64 MiB/TC); conservative (but functional) on v5e/v6e.
        return 44 * 1024 * 1024


def _block_spec(shape, index_map, buffers=None):
    """BlockSpec with an optional pipeline_mode; falls back if unsupported."""
    if buffers is None or not hasattr(pl, "Buffered"):
        return pl.BlockSpec(shape, index_map)
    try:
        return pl.BlockSpec(shape, index_map, pipeline_mode=pl.Buffered(buffers))
    except TypeError:
        return pl.BlockSpec(shape, index_map)


def _linear_kernel(x_ref, wt_ref, b_ref, o_ref, acc_ref):
    # x_ref  : (tm, tk)   input rows tile (pipelined per grid step)
    # wt_ref : (tk, tn)   pre-transposed weight tile (resident when grid-invariant)
    # b_ref  : (1, tn)    bias tile, f32
    # o_ref  : (tm, tn)   output tile (written on last K step)
    # acc_ref: (tm, tn)   f32 accumulator scratch
    k = pl.program_id(2)

    @pl.when(k == 0)
    def _():
        acc_ref[...] = jnp.zeros_like(acc_ref)

    acc_ref[...] += jnp.dot(
        x_ref[...].astype(wt_ref.dtype), wt_ref[...],
        preferred_element_type=jnp.float32)

    @pl.when(k == pl.num_programs(2) - 1)
    def _():
        o_ref[...] = (acc_ref[...] + b_ref[...].astype(jnp.float32)
                      ).astype(o_ref.dtype)


def prepare_linear_params(weight, bias, *, param_dtype=None):
    """One-time parameter prep (do at init, NOT per forward call).

    weight : (out_ch, in_ch)  -- PyTorch nn.Linear convention
    bias   : (out_ch,)
    Returns:
      wt_pad : (k_pad, out_pad)  W^T zero-padded.  out_ch -> multiple of 128
               (lane-dense, unmasked vst).  in_ch -> multiple of 128 only when
               in_ch >= 128 (keeps tiny-K shapes from inflating x traffic
               while making large K tileable).
      b_pad  : (1, out_pad)      bias kept in f32 (VPU bias add stays f32).
    """
    out_ch, in_ch = weight.shape
    if param_dtype is None:
        param_dtype = weight.dtype
    out_pad = _round_up(out_ch, LANE)
    k_pad = _round_up(in_ch, LANE) if in_ch >= LANE else in_ch
    wt = jnp.zeros((k_pad, out_pad), param_dtype)
    wt = wt.at[:in_ch, :out_ch].set(weight.T.astype(param_dtype))
    b2 = jnp.zeros((1, out_pad), jnp.float32)
    b2 = b2.at[0, :out_ch].set(bias.astype(jnp.float32))
    return wt, b2


def pad_features(x, k_pad):
    """Pad x's feature dim to wt_pad's K dim.  Do this ONCE at model ingest."""
    k = x.shape[-1]
    if k == k_pad:
        return x
    return jnp.pad(x, ((0, 0), (0, k_pad - k)))


def hgnn_fc_forward(x, wt_pad, b_pad, out_ch, *, max_tm=1024, max_tn=512,
                    max_tk=1024, vmem_budget_bytes=96 * 1024 * 1024):
    """Pallas equivalent of nn.Linear(in_ch, out_ch)(x) with pre-prepped params.

    x      : (N, in_ch) -- ideally already padded to wt_pad.shape[0] features
             via pad_features() at ingest; a fallback pad happens here otherwise.
    wt_pad : (k_pad, out_pad)  from prepare_linear_params
    b_pad  : (1, out_pad)      from prepare_linear_params
    out_ch : true (unpadded) output width
    """
    k_dim, out_pad = wt_pad.shape
    if x.shape[-1] != k_dim:
        # Fallback only; prefer pad_features() once at ingest (saves an HBM copy/call).
        x = pad_features(x, k_dim)
    n = x.shape[0]

    x_item = jnp.dtype(x.dtype).itemsize
    w_item = jnp.dtype(wt_pad.dtype).itemsize
    o_item = x_item

    budget = min(vmem_budget_bytes, _vmem_cap_bytes())

    # ---------------- tile selection ----------------
    min_tm = 128 if n >= 128 else _round_up(n, SUBLANE)
    tm = min(_round_up(n, SUBLANE), _round_up(max_tm, SUBLANE))

    tn = _pick_tile(out_pad, max_tn)
    # v7x megacore: with a single row tile, split the (parallel) out axis into
    # >=2 tiles so both TensorCores get work.  Harmless no-op cost on 1-TC parts.
    if pl.cdiv(n, tm) == 1 and out_pad // tn == 1 and out_pad >= 2 * LANE:
        tn = _pick_tile(out_pad, out_pad // 2)

    # Tile K only when it is 128-aligned (a ragged K block would pull garbage
    # into the reduction); small unaligned in_ch stays one full-width tile.
    tk = _pick_tile(k_dim, max_tk) if k_dim % LANE == 0 else k_dim

    def buf_counts(tm_, tn_, tk_):
        k_tiles_ = k_dim // tk_
        out_tiles_ = out_pad // tn_
        w_bufs_ = 1 if (k_tiles_ == 1 and out_tiles_ == 1) else 2
        b_bufs_ = 1 if out_tiles_ == 1 else 2
        # GEMV-like shapes (tiny K, single K tile): a 3rd x buffer hides DMA
        # latency behind the short per-step matmul -- only when the grid is
        # long enough to use it.
        steps = pl.cdiv(n, tm_) * out_tiles_
        x_bufs_ = 3 if (k_tiles_ == 1 and k_dim <= 2 * LANE and steps >= 3) else 2
        return x_bufs_, w_bufs_, b_bufs_

    def vmem_bytes(tm_, tn_, tk_):
        x_bufs_, w_bufs_, b_bufs_ = buf_counts(tm_, tn_, tk_)
        return (x_bufs_ * tm_ * tk_ * x_item
                + w_bufs_ * tk_ * tn_ * w_item
                + b_bufs_ * tn_ * 4
                + 2 * tm_ * tn_ * o_item       # double-buffered output writeback
                + tm_ * tn_ * 4)               # f32 accumulator scratch

    # Shrink K first, then the out tile, then (last resort) rows -- never give
    # up MXU-shaped tiles just to keep the whole weight resident.
    while vmem_bytes(tm, tn, tk) > budget:
        if tk > LANE and k_dim % LANE == 0:
            tk = _pick_tile(k_dim, tk // 2)
        elif tn > LANE:
            tn = _pick_tile(out_pad, tn // 2)
        elif tm > min_tm:
            tm = max(min_tm, _round_up(tm // 2, SUBLANE))
        else:
            break

    rows = pl.cdiv(n, tm)            # ragged last row block: no jnp.pad, no row slice
    out_tiles = out_pad // tn
    k_tiles = k_dim // tk
    x_bufs, w_bufs, b_bufs = buf_counts(tm, tn, tk)

    grid = (rows, out_tiles, k_tiles)

    cost = pl.CostEstimate(
        flops=2 * n * k_dim * out_pad,
        transcendentals=0,
        bytes_accessed=(n * k_dim * x_item + k_dim * out_pad * w_item
                        + out_pad * 4 + n * out_pad * o_item),
    )

    est = vmem_bytes(tm, tn, tk)
    vmem_limit = int(min(_vmem_cap_bytes(),
                         max(est + 4 * 1024 * 1024, 32 * 1024 * 1024)))

    def build(use_pipeline_modes):
        x_buf = (3 if x_bufs == 3 else None) if use_pipeline_modes else None
        w_buf = (1 if w_bufs == 1 else None) if use_pipeline_modes else None
        b_buf = (1 if b_bufs == 1 else None) if use_pipeline_modes else None
        return pl.pallas_call(
            _linear_kernel,
            out_shape=jax.ShapeDtypeStruct((n, out_pad), x.dtype),
            grid_spec=pltpu.PrefetchScalarGridSpec(
                num_scalar_prefetch=0,
                grid=grid,
                in_specs=[
                    _block_spec((tm, tk), lambda i, j, k: (i, k), x_buf),   # x tile
                    _block_spec((tk, tn), lambda i, j, k: (k, j), w_buf),   # W^T tile
                    _block_spec((1, tn), lambda i, j, k: (0, j), b_buf),    # bias tile
                ],
                out_specs=pl.BlockSpec((tm, tn), lambda i, j, k: (i, j)),
                scratch_shapes=[pltpu.VMEM((tm, tn), jnp.float32)],
            ),
            compiler_params=pltpu.CompilerParams(
                dimension_semantics=("parallel", "parallel", "arbitrary"),
                vmem_limit_bytes=vmem_limit,
            ),
            cost_estimate=cost,
        )

    try:
        y = build(True)(x, wt_pad, b_pad)
    except Exception:
        # Fallback for jax versions without BlockSpec pipeline_mode support.
        y = build(False)(x, wt_pad, b_pad)

    return y if out_pad == out_ch else y[:, :out_ch]


if __name__ == "__main__":
    # --- Case 1: small HGNN_fc shapes (N, in_ch) -> (N, out_ch), single-tile grid.
    N, IN_CH, OUT_CH = 8, 32, 16
    key = jax.random.PRNGKey(0)
    kx, kw, kb = jax.random.split(key, 3)
    bound = 1.0 / (IN_CH ** 0.5)
    x = jax.random.normal(kx, (N, IN_CH), dtype=jnp.float32)
    weight = jax.random.uniform(kw, (OUT_CH, IN_CH), dtype=jnp.float32,
                                minval=-bound, maxval=bound)
    bias = jax.random.uniform(kb, (OUT_CH,), dtype=jnp.float32,
                              minval=-bound, maxval=bound)

    wt_pad, b_pad = prepare_linear_params(weight, bias)   # one-time prep
    x_in = pad_features(x, wt_pad.shape[0])               # ingest-time pad (no-op here)
    y = jax.block_until_ready(hgnn_fc_forward(x_in, wt_pad, b_pad, OUT_CH))
    y_ref = x @ weight.T + bias
    assert y.shape == (N, OUT_CH)
    assert jnp.allclose(y, y_ref, atol=1e-5, rtol=1e-5)

    # --- Case 2: multi-row-tile grid with a ragged last block (no pad/slice copies).
    N2, IN2, OUT2 = 1056, 128, 256
    k2x, k2w, k2b = jax.random.split(jax.random.PRNGKey(1), 3)
    bound2 = 1.0 / (IN2 ** 0.5)
    x2 = jax.random.normal(k2x, (N2, IN2), dtype=jnp.float32)
    w2 = jax.random.uniform(k2w, (OUT2, IN2), dtype=jnp.float32,
                            minval=-bound2, maxval=bound2)
    b2 = jax.random.uniform(k2b, (OUT2,), dtype=jnp.float32,
                            minval=-bound2, maxval=bound2)
    wt2_pad, b2_pad = prepare_linear_params(w2, b2)
    x2_in = pad_features(x2, wt2_pad.shape[0])
    y2 = jax.block_until_ready(hgnn_fc_forward(x2_in, wt2_pad, b2_pad, OUT2))
    y2_ref = x2 @ w2.T + b2
    assert y2.shape == (N2, OUT2)
    assert jnp.allclose(y2, y2_ref, atol=1e-4, rtol=1e-4)

    # --- Case 3: tight VMEM budget -> exercises K tiling + out tiling + f32
    #     accumulator + padded K features (ingest-time pad_features).
    N3, IN3, OUT3 = 300, 500, 384
    k3x, k3w, k3b = jax.random.split(jax.random.PRNGKey(2), 3)
    bound3 = 1.0 / (IN3 ** 0.5)
    x3 = jax.random.normal(k3x, (N3, IN3), dtype=jnp.float32)
    w3 = jax.random.uniform(k3w, (OUT3, IN3), dtype=jnp.float32,
                            minval=-bound3, maxval=bound3)
    b3 = jax.random.uniform(k3b, (OUT3,), dtype=jnp.float32,
                            minval=-bound3, maxval=bound3)
    wt3_pad, b3_pad = prepare_linear_params(w3, b3)        # K padded 500 -> 512
    x3_in = pad_features(x3, wt3_pad.shape[0])             # ingest-time pad
    y3 = jax.block_until_ready(
        hgnn_fc_forward(x3_in, wt3_pad, b3_pad, OUT3,
                        vmem_budget_bytes=1 * 1024 * 1024))
    y3_ref = x3 @ w3.T + b3
    assert y3.shape == (N3, OUT3)
    assert jnp.allclose(y3, y3_ref, atol=2e-3, rtol=2e-3)

    print("KERNEL_OK")
</pallas_src>

<mosaic_0001>
module attributes {stable_mosaic.version = 11 : i64} {
  func.func @_linear_kernel(%arg0: i32, %arg1: i32, %arg2: i32, %arg3: memref<8x32xf32, #tpu.memory_space<vmem>>, %arg4: memref<32x128xf32, #tpu.memory_space<vmem>>, %arg5: memref<1x128xf32, #tpu.memory_space<vmem>>, %arg6: memref<8x128xf32, #tpu.memory_space<vmem>>, %arg7: memref<8x128xf32, #tpu.memory_space<vmem>>) attributes {dimension_semantics = [#tpu.dimension_semantics<parallel>, #tpu.dimension_semantics<parallel>, #tpu.dimension_semantics<arbitrary>], iteration_bounds = array<i64: 1, 1, 1>, scalar_prefetch = 0 : i64, scratch_operands = 1 : i64, tpu.core_type = #tpu.core_type<tc>, window_params = [{transform_indices = @transform_0, window_bounds = array<i64: 8, 32>}, {pipeline_mode = #tpu.pipeline_mode<synchronous>, transform_indices = @transform_1, window_bounds = array<i64: 32, 128>}, {pipeline_mode = #tpu.pipeline_mode<synchronous>, transform_indices = @transform_2, window_bounds = array<i64: 1, 128>}, {transform_indices = @transform_3, window_bounds = array<i64: 8, 128>}]} {
    %c0_i32 = arith.constant 0 : i32
    %0 = arith.cmpi eq, %arg2, %c0_i32 : i32
    %1 = arith.extui %0 : i1 to i32
    %c0_i32_0 = arith.constant 0 : i32
    %2 = arith.cmpi ne, %1, %c0_i32_0 : i32
    scf.if %2 {
      %cst_10 = arith.constant 0.000000e+00 : f32
      %12 = vector.broadcast %cst_10 : f32 to vector<8x128xf32>
      %c0_11 = arith.constant 0 : index
      %c0_12 = arith.constant 0 : index
      %13 = vector.load %arg7[%c0_11, %c0_12] : memref<8x128xf32, #tpu.memory_space<vmem>>, vector<8x128xf32>
      tpu.vector_store %arg7[%c0_11, %c0_12], %12 {strides = array<i32>} : memref<8x128xf32, #tpu.memory_space<vmem>>, vector<8x128xf32>,
    } else {
    }
    %c0 = arith.constant 0 : index
    %c0_1 = arith.constant 0 : index
    %3 = vector.load %arg7[%c0, %c0_1] : memref<8x128xf32, #tpu.memory_space<vmem>>, vector<8x128xf32>
    %c0_2 = arith.constant 0 : index
    %c0_3 = arith.constant 0 : index
    %4 = vector.load %arg3[%c0_2, %c0_3] : memref<8x32xf32, #tpu.memory_space<vmem>>, vector<8x32xf32>
    %c0_4 = arith.constant 0 : index
    %c0_5 = arith.constant 0 : index
    %5 = vector.load %arg4[%c0_4, %c0_5] : memref<32x128xf32, #tpu.memory_space<vmem>>, vector<32x128xf32>
    %cst = arith.constant dense<0.000000e+00> : vector<8x128xf32>
    %6 = tpu.matmul %4, %5, %cst {dimension_numbers = #tpu.dot_dimension_numbers<[1], [0], [0], [1], [0, 0, 1, 1], [], []>} : vector<8x32xf32>, vector<32x128xf32>, vector<8x128xf32> -> vector<8x128xf32>
    %7 = arith.addf %3, %6 : vector<8x128xf32>
    %c0_6 = arith.constant 0 : index
    %c0_7 = arith.constant 0 : index
    %8 = vector.load %arg7[%c0_6, %c0_7] : memref<8x128xf32, #tpu.memory_space<vmem>>, vector<8x128xf32>
    tpu.vector_store %arg7[%c0_6, %c0_7], %7 {strides = array<i32>} : memref<8x128xf32, #tpu.memory_space<vmem>>, vector<8x128xf32>,
    %c0_i32_8 = arith.constant 0 : i32
    %9 = arith.cmpi eq, %arg2, %c0_i32_8 : i32
    %10 = arith.extui %9 : i1 to i32
    %c0_i32_9 = arith.constant 0 : i32
    %11 = arith.cmpi ne, %10, %c0_i32_9 : i32
    scf.if %11 {
      %c0_10 = arith.constant 0 : index
      %c0_11 = arith.constant 0 : index
      %12 = vector.load %arg7[%c0_10, %c0_11] : memref<8x128xf32, #tpu.memory_space<vmem>>, vector<8x128xf32>
      %c0_12 = arith.constant 0 : index
      %c0_13 = arith.constant 0 : index
      %13 = vector.load %arg5[%c0_12, %c0_13] : memref<1x128xf32, #tpu.memory_space<vmem>>, vector<1x128xf32>
      %14 = vector.broadcast %13 : vector<1x128xf32> to vector<8x128xf32>
      %15 = arith.addf %12, %14 : vector<8x128xf32>
      %c0_14 = arith.constant 0 : index
      %c0_15 = arith.constant 0 : index
      %16 = vector.load %arg6[%c0_14, %c0_15] : memref<8x128xf32, #tpu.memory_space<vmem>>, vector<8x128xf32>
      tpu.vector_store %arg6[%c0_14, %c0_15], %15 {strides = array<i32>} : memref<8x128xf32, #tpu.memory_space<vmem>>, vector<8x128xf32>,
    } else {
    }
    return
  }
  func.func @transform_0(%arg0: i32, %arg1: i32, %arg2: i32) -> (i32, i32) {
    %c0_i32 = arith.constant 0 : i32
    return %arg0, %arg2 : i32, i32
  }
  func.func @transform_1(%arg0: i32, %arg1: i32, %arg2: i32) -> (i32, i32) {
    %c0_i32 = arith.constant 0 : i32
    return %arg2, %arg1 : i32, i32
  }
  func.func @transform_2(%arg0: i32, %arg1: i32, %arg2: i32) -> (i32, i32) {
    %c0_i32 = arith.constant 0 : i32
    %c0_i32_0 = arith.constant 0 : i32
    return %c0_i32, %arg1 : i32, i32
  }
  func.func @transform_3(%arg0: i32, %arg1: i32, %arg2: i32) -> (i32, i32) {
    %c0_i32 = arith.constant 0 : i32
    return %arg0, %arg1 : i32, i32
  }
}

module attributes {stable_mosaic.version = 11 : i64} {
  func.func @_linear_kernel(%arg0: i32, %arg1: i32, %arg2: i32, %arg3: memref<8x32xf32, #tpu.memory_space<vmem>>, %arg4: memref<32x128xf32, #tpu.memory_space<vmem>>, %arg5: memref<1x128xf32, #tpu.memory_space<vmem>>, %arg6: memref<8x128xf32, #tpu.memory_space<vmem>>, %arg7: memref<8x128xf32, #tpu.memory_space<vmem>>) attributes {dimension_semantics = [#tpu.dimension_semantics<parallel>, #tpu.dimension_semantics<parallel>, #tpu.dimension_semantics<arbitrary>], iteration_bounds = array<i64: 1, 1, 1>, scalar_prefetch = 0 : i64, scratch_operands = 1 : i64, tpu.core_type = #tpu.core_type<tc>, window_params = [{transform_indices = @transform_0, window_bounds = array<i64: 8, 32>}, {transform_indices = @transform_1, window_bounds = array<i64: 32, 128>}, {transform_indices = @transform_2, window_bounds = array<i64: 1, 128>}, {transform_indices = @transform_3, window_bounds = array<i64: 8, 128>}]} {
    %c0_i32 = arith.constant 0 : i32
    %0 = arith.cmpi eq, %arg2, %c0_i32 : i32
    %1 = arith.extui %0 : i1 to i32
    %c0_i32_0 = arith.constant 0 : i32
    %2 = arith.cmpi ne, %1, %c0_i32_0 : i32
    scf.if %2 {
      %cst_10 = arith.constant 0.000000e+00 : f32
      %12 = vector.broadcast %cst_10 : f32 to vector<8x128xf32>
      %c0_11 = arith.constant 0 : index
      %c0_12 = arith.constant 0 : index
      %13 = vector.load %arg7[%c0_11, %c0_12] : memref<8x128xf32, #tpu.memory_space<vmem>>, vector<8x128xf32>
      tpu.vector_store %arg7[%c0_11, %c0_12], %12 {strides = array<i32>} : memref<8x128xf32, #tpu.memory_space<vmem>>, vector<8x128xf32>,
    } else {
    }
    %c0 = arith.constant 0 : index
    %c0_1 = arith.constant 0 : index
    %3 = vector.load %arg7[%c0, %c0_1] : memref<8x128xf32, #tpu.memory_space<vmem>>, vector<8x128xf32>
    %c0_2 = arith.constant 0 : index
    %c0_3 = arith.constant 0 : index
    %4 = vector.load %arg3[%c0_2, %c0_3] : memref<8x32xf32, #tpu.memory_space<vmem>>, vector<8x32xf32>
    %c0_4 = arith.constant 0 : index
    %c0_5 = arith.constant 0 : index
    %5 = vector.load %arg4[%c0_4, %c0_5] : memref<32x128xf32, #tpu.memory_space<vmem>>, vector<32x128xf32>
    %cst = arith.constant dense<0.000000e+00> : vector<8x128xf32>
    %6 = tpu.matmul %4, %5, %cst {dimension_numbers = #tpu.dot_dimension_numbers<[1], [0], [0], [1], [0, 0, 1, 1], [], []>} : vector<8x32xf32>, vector<32x128xf32>, vector<8x128xf32> -> vector<8x128xf32>
    %7 = arith.addf %3, %6 : vector<8x128xf32>
    %c0_6 = arith.constant 0 : index
    %c0_7 = arith.constant 0 : index
    %8 = vector.load %arg7[%c0_6, %c0_7] : memref<8x128xf32, #tpu.memory_space<vmem>>, vector<8x128xf32>
    tpu.vector_store %arg7[%c0_6, %c0_7], %7 {strides = array<i32>} : memref<8x128xf32, #tpu.memory_space<vmem>>, vector<8x128xf32>,
    %c0_i32_8 = arith.constant 0 : i32
    %9 = arith.cmpi eq, %arg2, %c0_i32_8 : i32
    %10 = arith.extui %9 : i1 to i32
    %c0_i32_9 = arith.constant 0 : i32
    %11 = arith.cmpi ne, %10, %c0_i32_9 : i32
    scf.if %11 {
      %c0_10 = arith.constant 0 : index
      %c0_11 = arith.constant 0 : index
      %12 = vector.load %arg7[%c0_10, %c0_11] : memref<8x128xf32, #tpu.memory_space<vmem>>, vector<8x128xf32>
      %c0_12 = arith.constant 0 : index
      %c0_13 = arith.constant 0 : index
      %13 = vector.load %arg5[%c0_12, %c0_13] : memref<1x128xf32, #tpu.memory_space<vmem>>, vector<1x128xf32>
      %14 = vector.broadcast %13 : vector<1x128xf32> to vector<8x128xf32>
      %15 = arith.addf %12, %14 : vector<8x128xf32>
      %c0_14 = arith.constant 0 : index
      %c0_15 = arith.constant 0 : index
      %16 = vector.load %arg6[%c0_14, %c0_15] : memref<8x128xf32, #tpu.memory_space<vmem>>, vector<8x128xf32>
      tpu.vector_store %arg6[%c0_14, %c0_15], %15 {strides = array<i32>} : memref<8x128xf32, #tpu.memory_space<vmem>>, vector<8x128xf32>,
    } else {
    }
    return
  }
  func.func @transform_0(%arg0: i32, %arg1: i32, %arg2: i32) -> (i32, i32) {
    %c0_i32 = arith.constant 0 : i32
    return %arg0, %arg2 : i32, i32
  }
  func.func @transform_1(%arg0: i32, %arg1: i32, %arg2: i32) -> (i32, i32) {
    %c0_i32 = arith.constant 0 : i32
    return %arg2, %arg1 : i32, i32
  }
  func.func @transform_2(%arg0: i32, %arg1: i32, %arg2: i32) -> (i32, i32) {
    %c0_i32 = arith.constant 0 : i32
    %c0_i32_0 = arith.constant 0 : i32
    return %c0_i32, %arg1 : i32, i32
  }
  func.func @transform_3(%arg0: i32, %arg1: i32, %arg2: i32) -> (i32, i32) {
    %c0_i32 = arith.constant 0 : i32
    return %arg0, %arg1 : i32, i32
  }
}

</mosaic_0001>

<bundles_post_ra>
// kernel: tpu_custom_call.1
= control target key start
LH: loop header
LB: loop body
LE: loop exit
PB: predicated region body
PF: predicated region fallthrough
CT: control target
= control target key end

     0   :  { %8 = vsyncpa [#allocation4], 0  ;;  %s232_s0 = inlined_call_operand.hbm [shape: f32[8,32], index: 0, kind: input, shape index: {}]   ;;  %s233_s1 = inlined_call_operand.hbm [shape: f32[32,128], index: 1, kind: input, shape index: {}]   ;;  %s234_s2 = inlined_call_operand.vmem [shape: f32[1,128], index: 2, kind: input, shape index: {}]   ;;  %s235_s3 = inlined_call_operand.hbm [shape: f32[8,128], index: 3, kind: output, shape index: {}]  }
   0x1   :  { %9 = vsyncpa [#allocation7], 0 }
   0x2   :  { %10 = vsyncpa [#allocation5], 0  ;;  %s16_s14 = sshll.u32 %s232_s0, 4  ;;  %s195_s15 = smov [#allocation3]   ;;  %s17_s14 = int_to_ptr.hbm [resolvable:$true] %s16_s14 }
   0x3   :  { %s18_s16 = sshll.u32 %s195_s15, 4  ;;  %s26_s19 = sshll.u32 %s233_s1, 4  ;;  %s19_s16 = int_to_ptr.vmem [resolvable:$true] %s18_s16  ;;  %s27_s19 = int_to_ptr.hbm [resolvable:$true] %s26_s19 }
   0x4   :  { %21 = dma.hbm_to_vmem [thread:$0]  %s17_s14, 128, %s19_s16, [#allocation4]  }
   0x5   :  { %s196_s20 = smov [#allocation6]   ;;  %s197_s22 = smov 128  }
   0x6   :  { %s28_s21 = sshll.u32 %s196_s20, 4  ;;  %s198_s23 = smov 8   ;;  %s29_s21 = int_to_ptr.vmem [resolvable:$true] %s28_s21 }
   0x7   :  { %34 = dma.hbm_to_vmem [thread:$0]  %s27_s19, 512, %s29_s21, [#allocation7], %s197_s22, %s197_s22, %s198_s23  }
   0x8   :  { %189 = dma.done.wait [#allocation4], 128  }
   0x9   :  { %190 = vsyncadd [#allocation4], 4294967168 }
   0xa   :  { %191 = dma.done.wait [#allocation7], 512  }
   0xb   :  { %192 = vsyncadd [#allocation7], 4294966784  ;;  %v55_v0 = vld [vmem:[#allocation6 + $0x18] sm:$0xff]  ;;  %v54_v1 = vld [vmem:[#allocation6 + $0x10] sm:$0xff]  ;;  %vm56_vm0 = vcmask 261120   ;;  %s199_s24 = smov [#allocation8]  }
   0xc   :  { %72 = vmatpush.msra.mxu0 %v55_v0  ;;  %v53_v2 = vld [vmem:[#allocation6 + $0x8] sm:$0xff]  ;;  %v52_v3 = vld [vmem:[#allocation6] sm:$0xff]  ;;  %v51_v4 = vld [vmem:[#allocation3] sm:$0xff]  ;;  %s97_s25 = sshll.u32 %s199_s24, 4  ;;  %s99_s28 = sshll.u32 %s235_s3, 4  ;;  %s98_s25 = int_to_ptr.vmem [resolvable:$true] %s97_s25  ;;  %s100_s28 = int_to_ptr.hbm [resolvable:$true] %s99_s28 }
   0xd   :  { %v116_v5 = vld [vmem:[%s234_s2] ss:$0 sm:$0xff] }
   0xe   :  { %73 = vmatpush.msra.mxu0 %v54_v1 }
  0x10   :  { %74 = vmatpush.msra.mxu0 %v53_v2 }
  0x12   :  { %75 = vmatpush.msra.mxu0 %v52_v3 }
  0x13   :  { %110 = vmatmul.msk.f32.vlgmr.msra.gmra.mxu0 %vm56_vm0, %v51_v4 }
  0x90   :  { %v77_v6 = vpop.f32.mrf.mxu0 }
  0x91   :  { %v90_v7 = vadd.f32 %v116_v5, %v77_v6 }
  0x93   :  { %91 = vst [vmem:[#allocation8] sm:$0xff] %v90_v7 }
  0x94   :  { %102 = dma.vmem_to_hbm [thread:$0]  %s98_s25, 128, %s100_s28, [#allocation5]  }
  0x95   :  { %193 = dma.done.wait [#allocation5], 128  }
  0x96   :  { %194 = vsyncadd [#allocation5], 4294967168 }
  0x97   :  { %107 = vsyncpa [#allocation4], 1 }
  0x98   :  { %108 = vsyncpa [#allocation7], 1 }
  0x99   :  { %109 = vsyncpa [#allocation5], 1 }

// kernel: tpu_custom_call.1
= control target key start
LH: loop header
LB: loop body
LE: loop exit
PB: predicated region body
PF: predicated region fallthrough
CT: control target
= control target key end

     0   :  { %8 = vsyncpa [#allocation4], 0  ;;  %s232_s0 = inlined_call_operand.hbm [shape: f32[8,32], index: 0, kind: input, shape index: {}]   ;;  %s233_s1 = inlined_call_operand.hbm [shape: f32[32,128], index: 1, kind: input, shape index: {}]   ;;  %s234_s2 = inlined_call_operand.vmem [shape: f32[1,128], index: 2, kind: input, shape index: {}]   ;;  %s235_s3 = inlined_call_operand.hbm [shape: f32[8,128], index: 3, kind: output, shape index: {}]  }
   0x1   :  { %9 = vsyncpa [#allocation7], 0 }
   0x2   :  { %10 = vsyncpa [#allocation5], 0  ;;  %s16_s14 = sshll.u32 %s232_s0, 4  ;;  %s195_s15 = smov [#allocation3]   ;;  %s17_s14 = int_to_ptr.hbm [resolvable:$true] %s16_s14 }
   0x3   :  { %s18_s16 = sshll.u32 %s195_s15, 4  ;;  %s26_s19 = sshll.u32 %s233_s1, 4  ;;  %s19_s16 = int_to_ptr.vmem [resolvable:$true] %s18_s16  ;;  %s27_s19 = int_to_ptr.hbm [resolvable:$true] %s26_s19 }
   0x4   :  { %21 = dma.hbm_to_vmem [thread:$0]  %s17_s14, 128, %s19_s16, [#allocation4]  }
   0x5   :  { %s196_s20 = smov [#allocation6]   ;;  %s197_s22 = smov 128  }
   0x6   :  { %s28_s21 = sshll.u32 %s196_s20, 4  ;;  %s198_s23 = smov 8   ;;  %s29_s21 = int_to_ptr.vmem [resolvable:$true] %s28_s21 }
   0x7   :  { %34 = dma.hbm_to_vmem [thread:$0]  %s27_s19, 512, %s29_s21, [#allocation7], %s197_s22, %s197_s22, %s198_s23  }
   0x8   :  { %189 = dma.done.wait [#allocation4], 128  }
   0x9   :  { %190 = vsyncadd [#allocation4], 4294967168 }
   0xa   :  { %191 = dma.done.wait [#allocation7], 512  }
   0xb   :  { %192 = vsyncadd [#allocation7], 4294966784  ;;  %v55_v0 = vld [vmem:[#allocation6 + $0x18] sm:$0xff]  ;;  %v54_v1 = vld [vmem:[#allocation6 + $0x10] sm:$0xff]  ;;  %vm56_vm0 = vcmask 261120   ;;  %s199_s24 = smov [#allocation8]  }
   0xc   :  { %72 = vmatpush.msra.mxu0 %v55_v0  ;;  %v53_v2 = vld [vmem:[#allocation6 + $0x8] sm:$0xff]  ;;  %v52_v3 = vld [vmem:[#allocation6] sm:$0xff]  ;;  %v51_v4 = vld [vmem:[#allocation3] sm:$0xff]  ;;  %s97_s25 = sshll.u32 %s199_s24, 4  ;;  %s99_s28 = sshll.u32 %s235_s3, 4  ;;  %s98_s25 = int_to_ptr.vmem [resolvable:$true] %s97_s25  ;;  %s100_s28 = int_to_ptr.hbm [resolvable:$true] %s99_s28 }
   0xd   :  { %v116_v5 = vld [vmem:[%s234_s2] ss:$0 sm:$0xff] }
   0xe   :  { %73 = vmatpush.msra.mxu0 %v54_v1 }
  0x10   :  { %74 = vmatpush.msra.mxu0 %v53_v2 }
  0x12   :  { %75 = vmatpush.msra.mxu0 %v52_v3 }
  0x13   :  { %110 = vmatmul.msk.f32.vlgmr.msra.gmra.mxu0 %vm56_vm0, %v51_v4 }
  0x90   :  { %v77_v6 = vpop.f32.mrf.mxu0 }
  0x91   :  { %v90_v7 = vadd.f32 %v116_v5, %v77_v6 }
  0x93   :  { %91 = vst [vmem:[#allocation8] sm:$0xff] %v90_v7 }
  0x94   :  { %102 = dma.vmem_to_hbm [thread:$0]  %s98_s25, 128, %s100_s28, [#allocation5]  }
  0x95   :  { %193 = dma.done.wait [#allocation5], 128  }
  0x96   :  { %194 = vsyncadd [#allocation5], 4294967168 }
  0x97   :  { %107 = vsyncpa [#allocation4], 1 }
  0x98   :  { %108 = vsyncpa [#allocation7], 1 }
  0x99   :  { %109 = vsyncpa [#allocation5], 1 }

</bundles_post_ra>
